<compile_context>
chip_gen: v6e
topology: v6e:2x2x1
jax: 0.10.0
libtpu: 0.0.40
codegen_flags: <defaults>
</compile_context>

<pallas_src>
import jax
import jax.numpy as jnp
import numpy as np
from jax.experimental import pallas as pl
from jax.experimental.pallas import tpu as pltpu


# ------------------------------ Pallas kernel --------------------------------

def _residual_mlp_kernel(x_ref, scale_ref, w1_ref, b1_ref, w2_ref, b2_ref, o_ref):
    """Fused residual block on a (tile_m, C) row slab:
       o = x + (relu(x @ W1 + b1) @ W2 + b2) * scale        (per-row scale)."""
    x = x_ref[...]                                           # (tm, C) f32
    # bf16 operands, f32 accumulation on the MXU.
    h = jnp.dot(x.astype(jnp.bfloat16), w1_ref[...],
                preferred_element_type=jnp.float32) + b1_ref[...]
    h = jnp.maximum(h, 0.0)
    y = jnp.dot(h.astype(jnp.bfloat16), w2_ref[...],
                preferred_element_type=jnp.float32) + b2_ref[...]
    o_ref[...] = x + y * scale_ref[...]                      # (tm,1) broadcast


# ----------------------------- pallas_call glue ------------------------------

def residual_forward(x, params, *, drop=0.0, training=False, key=None):
    """x: [B, N, C] float32.
       Eval:                    x + m(x)
       Training with drop > 0:  x + m(x) * (U[0,1) >= drop) / (1 - drop)  per sample."""
    B, N, C = x.shape
    Hd = params["w1"].shape[1]
    M = B * N
    assert M % 8 == 0, "pad B*N to a multiple of 8 before calling the kernel"

    # Per-sample stochastic-depth scale, expanded to one scalar per row.
    # (torch.rand on host reproduced with jax.random; .detach() is a no-op in fwd.)
    if training and drop > 0:
        u = jax.random.uniform(key, (B,), jnp.float32)
        scale_b = (u >= drop).astype(jnp.float32) / (1.0 - drop)
    else:
        scale_b = jnp.ones((B,), jnp.float32)
    scale = jnp.repeat(scale_b, N).reshape(M, 1)

    x2 = x.reshape(M, C)
    w1 = params["w1"].astype(jnp.bfloat16)
    w2 = params["w2"].astype(jnp.bfloat16)
    b1 = params["b1"].astype(jnp.float32)
    b2 = params["b2"].astype(jnp.float32)

    # Single grid step at small shapes; row-tile only when the slab gets big.
    tile_m = M if M <= 256 else 256
    assert M % tile_m == 0
    grid = (M // tile_m,)

    flops = 2 * M * (C * Hd + Hd * C)
    bytes_accessed = (2 * M * C * 4          # x in + out
                      + C * Hd * 2 + Hd * C * 2   # bf16 weights
                      + Hd * 4 + C * 4            # biases
                      + M * 4)                    # per-row scale

    out2 = pl.pallas_call(
        _residual_mlp_kernel,
        out_shape=jax.ShapeDtypeStruct((M, C), jnp.float32),
        grid=grid,
        in_specs=[
            pl.BlockSpec((tile_m, C), lambda i: (i, 0)),   # x rows
            pl.BlockSpec((tile_m, 1), lambda i: (i, 0)),   # per-row drop scale
            pl.BlockSpec((C, Hd),     lambda i: (0, 0)),   # W1 (bf16, resident)
            pl.BlockSpec((1, Hd),     lambda i: (0, 0)),   # b1
            pl.BlockSpec((Hd, C),     lambda i: (0, 0)),   # W2 (bf16, resident)
            pl.BlockSpec((1, C),      lambda i: (0, 0)),   # b2
        ],
        out_specs=pl.BlockSpec((tile_m, C), lambda i: (i, 0)),
        compiler_params=pltpu.CompilerParams(dimension_semantics=("parallel",)),
        cost_estimate=pl.CostEstimate(flops=flops, transcendentals=0,
                                      bytes_accessed=bytes_accessed),
    )(x2, scale, w1, b1, w2, b2)

    return out2.reshape(B, N, C)


# ------------------------------ pure-JAX reference ---------------------------

def reference_forward(x, params, *, drop=0.0, training=False, key=None):
    P = jax.lax.Precision.HIGHEST
    h = jnp.maximum(
        jnp.einsum("bnc,ch->bnh", x, params["w1"], precision=P) + params["b1"], 0.0)
    y = jnp.einsum("bnh,hc->bnc", h, params["w2"], precision=P) + params["b2"]
    if training and drop > 0:
        u = jax.random.uniform(key, (x.shape[0],), jnp.float32)
        scale = ((u >= drop).astype(jnp.float32) / (1.0 - drop)).reshape(-1, 1, 1)
        return x + y * scale
    return x + y


# ----------------------------------- main -------------------------------------

if __name__ == "__main__":
    key = jax.random.PRNGKey(0)
    B, N, C, Hd = 2, 16, 128, 256
    kx, k1, k2, k3, k4, kd = jax.random.split(key, 6)

    x = jax.random.normal(kx, (B, N, C), jnp.float32)
    params = dict(
        w1=(0.1 * jax.random.normal(k1, (C, Hd))).astype(jnp.float32),
        b1=(0.1 * jax.random.normal(k2, (1, Hd))).astype(jnp.float32),
        w2=(0.1 * jax.random.normal(k3, (Hd, C))).astype(jnp.float32),
        b2=(0.1 * jax.random.normal(k4, (1, C))).astype(jnp.float32),
    )

    # eval / inference branch:  x + m(x)
    out = jax.block_until_ready(residual_forward(x, params))
    assert out.shape == (B, N, C), out.shape
    ref = reference_forward(x, params)
    # kernel uses bf16 MXU operands (f32 accumulate); reference is f32 HIGHEST
    np.testing.assert_allclose(np.asarray(out), np.asarray(ref),
                               rtol=2e-2, atol=5e-2)

    # training branch with stochastic depth (same mask fed to kernel & reference)
    out_t = jax.block_until_ready(
        residual_forward(x, params, drop=0.25, training=True, key=kd))
    ref_t = reference_forward(x, params, drop=0.25, training=True, key=kd)
    np.testing.assert_allclose(np.asarray(out_t), np.asarray(ref_t),
                               rtol=2e-2, atol=5e-2)

    print("KERNEL_OK")
</pallas_src>

<mosaic_0001>
module attributes {stable_mosaic.version = 11 : i64} {
  func.func @_residual_mlp_kernel(%arg0: i32, %arg1: memref<32x128xf32, #tpu.memory_space<vmem>>, %arg2: memref<32x1xf32, #tpu.memory_space<vmem>>, %arg3: memref<128x256xbf16, #tpu.memory_space<vmem>>, %arg4: memref<1x256xf32, #tpu.memory_space<vmem>>, %arg5: memref<256x128xbf16, #tpu.memory_space<vmem>>, %arg6: memref<1x128xf32, #tpu.memory_space<vmem>>, %arg7: memref<32x128xf32, #tpu.memory_space<vmem>>) attributes {dimension_semantics = [#tpu.dimension_semantics<parallel>], iteration_bounds = array<i64: 1>, scalar_prefetch = 0 : i64, scratch_operands = 0 : i64, tpu.core_type = #tpu.core_type<tc>, window_params = [{transform_indices = @transform_0, window_bounds = array<i64: 32, 128>}, {transform_indices = @transform_1, window_bounds = array<i64: 32, 1>}, {pipeline_mode = #tpu.pipeline_mode<synchronous>, transform_indices = @transform_2, window_bounds = array<i64: 128, 256>}, {pipeline_mode = #tpu.pipeline_mode<synchronous>, transform_indices = @transform_3, window_bounds = array<i64: 1, 256>}, {pipeline_mode = #tpu.pipeline_mode<synchronous>, transform_indices = @transform_4, window_bounds = array<i64: 256, 128>}, {pipeline_mode = #tpu.pipeline_mode<synchronous>, transform_indices = @transform_5, window_bounds = array<i64: 1, 128>}, {transform_indices = @transform_6, window_bounds = array<i64: 32, 128>}]} {
    %c0 = arith.constant 0 : index
    %c0_0 = arith.constant 0 : index
    %0 = vector.load %arg1[%c0, %c0_0] : memref<32x128xf32, #tpu.memory_space<vmem>>, vector<32x128xf32>
    %1 = arith.truncf %0 : vector<32x128xf32> to vector<32x128xbf16>
    %c0_1 = arith.constant 0 : index
    %c0_2 = arith.constant 0 : index
    %2 = vector.load %arg3[%c0_1, %c0_2] : memref<128x256xbf16, #tpu.memory_space<vmem>>, vector<128x256xbf16>
    %cst = arith.constant dense<0.000000e+00> : vector<32x256xf32>
    %3 = tpu.matmul %1, %2, %cst {dimension_numbers = #tpu.dot_dimension_numbers<[1], [0], [0], [1], [0, 0, 1, 1], [], []>} : vector<32x128xbf16>, vector<128x256xbf16>, vector<32x256xf32> -> vector<32x256xf32>
    %c0_3 = arith.constant 0 : index
    %c0_4 = arith.constant 0 : index
    %4 = vector.load %arg4[%c0_3, %c0_4] : memref<1x256xf32, #tpu.memory_space<vmem>>, vector<1x256xf32>
    %5 = vector.broadcast %4 : vector<1x256xf32> to vector<32x256xf32>
    %6 = arith.addf %3, %5 : vector<32x256xf32>
    %cst_5 = arith.constant 0.000000e+00 : f32
    %7 = vector.broadcast %cst_5 : f32 to vector<32x256xf32>
    %8 = arith.maximumf %6, %7 : vector<32x256xf32>
    %9 = arith.truncf %8 : vector<32x256xf32> to vector<32x256xbf16>
    %c0_6 = arith.constant 0 : index
    %c0_7 = arith.constant 0 : index
    %10 = vector.load %arg5[%c0_6, %c0_7] : memref<256x128xbf16, #tpu.memory_space<vmem>>, vector<256x128xbf16>
    %cst_8 = arith.constant dense<0.000000e+00> : vector<32x128xf32>
    %11 = tpu.matmul %9, %10, %cst_8 {dimension_numbers = #tpu.dot_dimension_numbers<[1], [0], [0], [1], [0, 0, 1, 1], [], []>} : vector<32x256xbf16>, vector<256x128xbf16>, vector<32x128xf32> -> vector<32x128xf32>
    %c0_9 = arith.constant 0 : index
    %c0_10 = arith.constant 0 : index
    %12 = vector.load %arg6[%c0_9, %c0_10] : memref<1x128xf32, #tpu.memory_space<vmem>>, vector<1x128xf32>
    %13 = vector.broadcast %12 : vector<1x128xf32> to vector<32x128xf32>
    %14 = arith.addf %11, %13 : vector<32x128xf32>
    %c0_11 = arith.constant 0 : index
    %c0_12 = arith.constant 0 : index
    %15 = vector.load %arg2[%c0_11, %c0_12] : memref<32x1xf32, #tpu.memory_space<vmem>>, vector<32x1xf32>
    %16 = vector.broadcast %15 : vector<32x1xf32> to vector<32x128xf32>
    %17 = arith.mulf %14, %16 : vector<32x128xf32>
    %18 = arith.addf %0, %17 : vector<32x128xf32>
    %c0_13 = arith.constant 0 : index
    %c0_14 = arith.constant 0 : index
    %19 = vector.load %arg7[%c0_13, %c0_14] : memref<32x128xf32, #tpu.memory_space<vmem>>, vector<32x128xf32>
    tpu.vector_store %arg7[%c0_13, %c0_14], %18 {strides = array<i32>} : memref<32x128xf32, #tpu.memory_space<vmem>>, vector<32x128xf32>,
    return
  }
  func.func @transform_0(%arg0: i32) -> (i32, i32) {
    %c0_i32 = arith.constant 0 : i32
    %c0_i32_0 = arith.constant 0 : i32
    return %arg0, %c0_i32 : i32, i32
  }
  func.func @transform_1(%arg0: i32) -> (i32, i32) {
    %c0_i32 = arith.constant 0 : i32
    %c0_i32_0 = arith.constant 0 : i32
    return %arg0, %c0_i32 : i32, i32
  }
  func.func @transform_2(%arg0: i32) -> (i32, i32) {
    %c0_i32 = arith.constant 0 : i32
    %c0_i32_0 = arith.constant 0 : i32
    %c0_i32_1 = arith.constant 0 : i32
    return %c0_i32, %c0_i32_0 : i32, i32
  }
  func.func @transform_3(%arg0: i32) -> (i32, i32) {
    %c0_i32 = arith.constant 0 : i32
    %c0_i32_0 = arith.constant 0 : i32
    %c0_i32_1 = arith.constant 0 : i32
    return %c0_i32, %c0_i32_0 : i32, i32
  }
  func.func @transform_4(%arg0: i32) -> (i32, i32) {
    %c0_i32 = arith.constant 0 : i32
    %c0_i32_0 = arith.constant 0 : i32
    %c0_i32_1 = arith.constant 0 : i32
    return %c0_i32, %c0_i32_0 : i32, i32
  }
  func.func @transform_5(%arg0: i32) -> (i32, i32) {
    %c0_i32 = arith.constant 0 : i32
    %c0_i32_0 = arith.constant 0 : i32
    %c0_i32_1 = arith.constant 0 : i32
    return %c0_i32, %c0_i32_0 : i32, i32
  }
  func.func @transform_6(%arg0: i32) -> (i32, i32) {
    %c0_i32 = arith.constant 0 : i32
    %c0_i32_0 = arith.constant 0 : i32
    return %arg0, %c0_i32 : i32, i32
  }
}

</mosaic_0001>

<bundles_post_ra>
// kernel: tpu_custom_call.1
= control target key start
LH: loop header
LB: loop body
LE: loop exit
PB: predicated region body
PF: predicated region fallthrough
CT: control target
= control target key end

     0   :  { %11 = vsyncpa [#allocation3], 0  ;;  %s751_s0 = inlined_call_operand.vmem [shape: f32[32,128], index: 0, kind: input, shape index: {}]   ;;  %s752_s1 = inlined_call_operand.vmem [shape: f32[32,1], index: 1, kind: input, shape index: {}]   ;;  %s753_s2 = inlined_call_operand.hbm [shape: bf16[128,256], index: 2, kind: input, shape index: {}]   ;;  %s754_s3 = inlined_call_operand.vmem [shape: f32[1,256], index: 3, kind: input, shape index: {}]   ;;  %s755_s4 = inlined_call_operand.hbm [shape: bf16[256,128], index: 4, kind: input, shape index: {}]   ;;  %s756_s5 = inlined_call_operand.vmem [shape: f32[1,128], index: 5, kind: input, shape index: {}]   ;;  %s757_s6 = inlined_call_operand.hbm [shape: f32[32,128], index: 6, kind: output, shape index: {}]  }
   0x1   :  { %12 = vsyncpa [#allocation6], 0 }
   0x2   :  { %13 = vsyncpa [#allocation4], 0  ;;  %s647_s21 = smov [#allocation2]  }
   0x3   :  { %s23_s22 = sshll.u32 %s647_s21, 4  ;;  %s24_s22 = int_to_ptr.vmem [resolvable:$true] %s23_s22 }
   0x4   :  { %s589_s23 = scalar_lea.vmem %s24_s22, 2048  ;;  %p594_p1 = scmp.lt.s32.totalorder %s24_s22, %s24_s22 }
   0x5   :  { %p590_p0 = scmp.ne.s32.totalorder %s24_s22, %s589_s23  ;;  %p595_p2 = scmp.lt.s32.totalorder %s589_s23, %s589_s23 }
   0x7   :  { %p596_p3 = por %p595_p2, %p594_p1 }
   0x9   :  { %p597_p4 = pnand %p596_p3, %p590_p0 }
   0xb   :  { %600 = shalt.err (!%p597_p4)
}
   0xc   :  { %s648_s24 = smov 128   ;;  %s649_s25 = smov 8  }
   0xd   :  { %29 = dma.hbm_to_vmem [thread:$0]  %s753_s2, 2048, %s24_s22, [#allocation3], %s648_s24, %s648_s24, %s649_s25  }
   0xe   :  { %s650_s28 = smov [#allocation5]  }
   0xf   :  { %s37_s29 = sshll.u32 %s650_s28, 4  ;;  %s38_s29 = int_to_ptr.vmem [resolvable:$true] %s37_s29 }
  0x10   :  { %s609_s30 = scalar_lea.vmem %s38_s29, 2048  ;;  %p614_p6 = scmp.lt.s32.totalorder %s38_s29, %s38_s29 }
  0x11   :  { %p610_p5 = scmp.ne.s32.totalorder %s38_s29, %s609_s30  ;;  %p615_p7 = scmp.lt.s32.totalorder %s609_s30, %s609_s30 }
  0x13   :  { %p616_p8 = por %p615_p7, %p614_p6 }
  0x15   :  { %p617_p9 = pnand %p616_p8, %p610_p5 }
  0x17   :  { %620 = shalt.err (!%p617_p9)
}
  0x18   :  { %s651_s7 = smov 64   ;;  %s652_s8 = smov 4  }
  0x19   :  { %43 = dma.hbm_to_vmem [thread:$0]  %s755_s4, 2048, %s38_s29, [#allocation6], %s651_s7, %s651_s7, %s652_s8  }
  0x1a   :  { %641 = dma.done.wait [#allocation3], 2048  }
  0x1b   :  { %642 = vsyncadd [#allocation3], 4294965248 }
  0x1c   :  { %643 = dma.done.wait [#allocation6], 2048  }
  0x1d   :  { %644 = vsyncadd [#allocation6], 4294965248  ;;  %v653_v0 = vmov 0   ;;  %v541_v1 = vld [vmem:[#allocation2 + $0x74] ss:$8 sps:$4 sm:$0xff]   ;;  %v569_v16 = vld [vmem:[#allocation5 + $0x68] sm:$0xff]   ;;  %v77_v43 = vlaneseq }
  0x1e   :  { %199 = vmatprep.mubr.bf16.mxu0 %v653_v0  ;;  %539 = vset.pattern.permute.xlu0 %v653_v0  ;;  %v543_v2 = vld [vmem:[#allocation2 + $0x70] ss:$8 sps:$4 sm:$0xff]   ;;  %v544_v3 = vld [vmem:[#allocation2 + $0x64] ss:$8 sps:$4 sm:$0xff]   ;;  %v546_v4 = vld [vmem:[#allocation2 + $0x60] ss:$8 sps:$4 sm:$0xff]  }
  0x1f   :  { %540 = vset.pattern.permute.xlu1 %v653_v0  ;;  %167 = vmatprep.subr.bf16.mxu0 %v541_v1  ;;  %v547_v5 = vld [vmem:[#allocation2 + $0x54] ss:$8 sps:$4 sm:$0xff]   ;;  %v549_v6 = vld [vmem:[#allocation2 + $0x50] ss:$8 sps:$4 sm:$0xff]   ;;  %v550_v7 = vld [vmem:[#allocation2 + $0x44] ss:$8 sps:$4 sm:$0xff]  }
  0x20   :  { %168 = vmatpush1.bf16.msra.mxu0 %v543_v2  ;;  %v552_v8 = vld [vmem:[#allocation2 + $0x40] ss:$8 sps:$4 sm:$0xff]   ;;  %v553_v9 = vld [vmem:[#allocation2 + $0x34] ss:$8 sps:$4 sm:$0xff]   ;;  %v555_v11 = vld [vmem:[#allocation2 + $0x30] ss:$8 sps:$4 sm:$0xff]  }
  0x21   :  { %169 = vmatprep.subr.bf16.mxu0 %v544_v3  ;;  %v565_v10 = vld [vmem:[#allocation5 + $0x78] sm:$0xff]   ;;  %v556_v13 = vld [vmem:[#allocation2 + $0x24] ss:$8 sps:$4 sm:$0xff]   ;;  %v567_v14 = vld [vmem:[#allocation5 + $0x70] sm:$0xff]   ;;  %v78_v44 = vshrl.u32 %v77_v43, 7 }
  0x22   :  { %v566_v12 = vld [vmem:[#allocation5 + $0x38] sm:$0xff]   ;;  %503 = vmatprep.subr.bf16.mxu1 %v565_v10  ;;  %v568_v15 = vld [vmem:[#allocation5 + $0x30] sm:$0xff]   ;;  %v558_v17 = vld [vmem:[#allocation2 + $0x20] ss:$8 sps:$4 sm:$0xff]  }
  0x23   :  { %504 = vmatpush3.bf16.msra.mxu1 %v566_v12  ;;  %v559_v18 = vld [vmem:[#allocation2 + $0x14] ss:$8 sps:$4 sm:$0xff]   ;;  %v570_v19 = vld [vmem:[#allocation5 + $0x28] sm:$0xff]   ;;  %v571_v20 = vld [vmem:[#allocation5 + $0x60] sm:$0xff]   ;;  %v83_v45 = vsub.s32 1, %v78_v44  ;;  %v79_v46 = vsub.s32 0, %v78_v44 }
  0x24   :  { %170 = vmatpush1.bf16.msra.mxu0 %v546_v4  ;;  %505 = vmatprep.subr.bf16.mxu1 %v567_v14  ;;  %v561_v21 = vld [vmem:[#allocation2 + $0x10] ss:$8 sps:$4 sm:$0xff]   ;;  %v572_v22 = vld [vmem:[#allocation5 + $0x20] sm:$0xff]   ;;  %v707_v27 = vld [vmem:[%s751_s0 + $0x8] sm:$0xff] }
  0x25   :  { %171 = vmatprep.subr.bf16.mxu0 %v547_v5  ;;  %v562_v23 = vld [vmem:[#allocation2 + $0x4] ss:$8 sps:$4 sm:$0xff]   ;;  %v573_v24 = vld [vmem:[#allocation5 + $0x58] sm:$0xff]   ;;  %v564_v25 = vld [vmem:[#allocation2] ss:$8 sps:$4 sm:$0xff]  }
  0x26   :  { %v702_v26 = vld [vmem:[%s751_s0] sm:$0xff]  ;;  %v574_v28 = vld [vmem:[#allocation5 + $0x18] sm:$0xff]   ;;  %v714_v30 = vld [vmem:[%s751_s0 + $0x10] sm:$0xff] }
  0x27   :  { %506 = vmatpush3.bf16.msra.mxu1 %v568_v15  ;;  %v57_v29 = vpack.c.bf16 %v707_v27, %v702_v26  ;;  %v719_v31 = vld [vmem:[%s751_s0 + $0x18] sm:$0xff]  ;;  %v575_v33 = vld [vmem:[#allocation5 + $0x50] sm:$0xff]   ;;  %v577_v35 = vld [vmem:[#allocation5 + $0x48] sm:$0xff]  }
  0x28   :  { %172 = vmatpush1.bf16.msra.mxu0 %v549_v6  ;;  %507 = vmatprep.subr.bf16.mxu1 %v569_v16  ;;  %v58_v32 = vpack.c.bf16 %v719_v31, %v714_v30  ;;  %v576_v34 = vld [vmem:[#allocation5 + $0x10] sm:$0xff]   ;;  %v578_v36 = vld [vmem:[#allocation5 + $0x8] sm:$0xff]   ;;  %v579_v37 = vld [vmem:[#allocation5 + $0x40] sm:$0xff]  }
  0x29   :  { %173 = vmatprep.subr.bf16.mxu0 %v550_v7  ;;  %v580_v38 = vld [vmem:[#allocation5] sm:$0xff]   ;;  %v418_v40 = vld [vmem:[%s752_s1 + $0x10] sm:$0xff]  ;;  %v417_v41 = vld [vmem:[%s752_s1 + $0x8] sm:$0xff] }
  0x2a   :  { %v416_v39 = vld [vmem:[%s752_s1] sm:$0xff]  ;;  %432 = vperm.xlu1 %540, %v418_v40   ;;  %v419_v42 = vld [vmem:[%s752_s1 + $0x18] sm:$0xff] }
  0x2b   :  { %508 = vmatpush3.bf16.msra.mxu1 %v570_v19  ;;  %422 = vperm.xlu0 %539, %v416_v39   ;;  %v75_v47 = vld [vmem:[%s754_s3] sm:$0x3] }
  0x2c   :  { %174 = vmatpush1.bf16.msra.mxu0 %v552_v8  ;;  %509 = vmatprep.subr.bf16.mxu1 %v571_v20  ;;  %v84_v49 = vrot.slane %v75_v47, %v83_v45  ;;  %v80_v50 = vrot.slane %v75_v47, %v79_v46 }
  0x2d   :  { %175 = vmatprep.subr.bf16.mxu0 %v553_v9 }
  0x2e   :  { %437 = vperm.xlu1 %540, %v419_v42  }
  0x2f   :  { %510 = vmatpush3.bf16.msra.mxu1 %v572_v22  ;;  %427 = vperm.xlu0 %539, %v417_v41  }
  0x30   :  { %176 = vmatpush1.bf16.msra.mxu0 %v555_v11  ;;  %511 = vmatprep.subr.bf16.mxu1 %v573_v24 }
  0x31   :  { %177 = vmatprep.subr.bf16.mxu0 %v556_v13 }
  0x33   :  { %512 = vmatpush3.bf16.msra.mxu1 %v574_v28 }
  0x34   :  { %178 = vmatpush1.bf16.msra.mxu0 %v558_v17  ;;  %513 = vmatprep.subr.bf16.mxu1 %v575_v33  ;;  %v486_v17 = vld [vmem:[%s756_s5] ss:$0 sm:$0xff]  ;;  %s654_s5 = smov [#allocation7]  }
  0x35   :  { %179 = vmatprep.subr.bf16.mxu0 %v559_v18  ;;  %s457_s28 = sshll.u32 %s654_s5, 4  ;;  %s458_s28 = int_to_ptr.vmem [resolvable:$true] %s457_s28 }
  0x36   :  { %s621_s29 = scalar_lea.vmem %s458_s28, 512  ;;  %p626_p11 = scmp.lt.s32.totalorder %s458_s28, %s458_s28 }
  0x37   :  { %514 = vmatpush3.bf16.msra.mxu1 %v576_v34  ;;  %p622_p10 = scmp.ne.s32.totalorder %s458_s28, %s621_s29  ;;  %p627_p12 = scmp.lt.s32.totalorder %s621_s29, %s621_s29 }
  0x38   :  { %180 = vmatpush1.bf16.msra.mxu0 %v561_v21  ;;  %515 = vmatprep.subr.bf16.mxu1 %v577_v35 }
  0x39   :  { %181 = vmatprep.subr.bf16.mxu0 %v562_v23  ;;  %p628_p13 = por %p627_p12, %p626_p11 }
  0x3b   :  { %516 = vmatpush3.bf16.msra.mxu1 %v578_v36  ;;  %p629_p0 = pnand %p628_p13, %p622_p10 }
  0x3c   :  { %182 = vmatpush1.bf16.msra.mxu0 %v564_v25  ;;  %517 = vmatprep.subr.bf16.mxu1 %v579_v37 }
  0x3f   :  { %200 = vmatmul.mubr.bf16.vlgmr.msra.gmra.mxu0 %v57_v29  ;;  %518 = vmatpush3.bf16.msra.mxu1 %v580_v38 }
  0x40   :  { %209 = vmatprep.mubr.bf16.mxu0 %v653_v0 }
  0x47   :  { %210 = vmatmul.mubr.bf16.gmra.mxu0 %v58_v32 }
  0xa5   :  { %v433_v35 = vpop.permute.xlu1 %432 }
  0xa6   :  { %v423_v16 = vpop.permute.xlu0 %422 }
  0xa9   :  { %v438_v44 = vpop.permute.xlu1 %437 }
  0xaa   :  { %v428_v25 = vpop.permute.xlu0 %427 }
  0xff   :  { %v201_v48 = vpop.f32.mrf.mxu0 }
 0x100   :  { %v202_v55 = vadd.f32 %v201_v48, %v80_v50 }
 0x101   :  { %v203_v51 = vpop.f32.mrf.mxu0 }
 0x102   :  { %v204_v53 = vadd.f32 %v203_v51, %v84_v49  ;;  %v220_v62 = vmax.f32 %v202_v55, 0.0 }
 0x103   :  { %v205_v52 = vpop.f32.mrf.mxu0 }
 0x104   :  { %v206_v54 = vadd.f32 %v205_v52, %v80_v50  ;;  %v221_v60 = vmax.f32 %v204_v53, 0.0 }
 0x105   :  { %v207_v56 = vpop.f32.mrf.mxu0 }
 0x106   :  { %v208_v57 = vadd.f32 %v207_v56, %v84_v49  ;;  %v222_v58 = vmax.f32 %v206_v54, 0.0 }
 0x107   :  { %v211_v59 = vpop.f32.mrf.mxu0 }
 0x108   :  { %v223_v61 = vmax.f32 %v208_v57, 0.0  ;;  %v228_v1 = vpack.c.bf16 %v222_v58, %v220_v62  ;;  %v212_v5 = vadd.f32 %v211_v59, %v80_v50 }
 0x109   :  { %v213_v63 = vpop.f32.mrf.mxu0 }
 0x10a   :  { %v229_v0 = vpack.c.bf16 %v223_v61, %v221_v60  ;;  %v214_v3 = vadd.f32 %v213_v63, %v84_v49  ;;  %v224_v11 = vmax.f32 %v212_v5, 0.0 }
 0x10b   :  { %v215_v2 = vpop.f32.mrf.mxu0 }
 0x10c   :  { %v216_v4 = vadd.f32 %v215_v2, %v80_v50  ;;  %399 = vmatprep.mubr.bf16.mxu1 %v229_v0  ;;  %v225_v9 = vmax.f32 %v214_v3, 0.0 }
 0x10d   :  { %v217_v6 = vpop.f32.mrf.mxu0  ;;  %400 = vmatmul.mubr.bf16.vlgmr.msra.gmra.mxu1 %v228_v1 }
 0x10e   :  { %v218_v7 = vadd.f32 %v217_v6, %v84_v49  ;;  %v226_v8 = vmax.f32 %v216_v4, 0.0 }
 0x110   :  { %v227_v10 = vmax.f32 %v218_v7, 0.0  ;;  %v230_v13 = vpack.c.bf16 %v226_v8, %v224_v11 }
 0x112   :  { %v231_v12 = vpack.c.bf16 %v227_v10, %v225_v9 }
 0x114   :  { %407 = vmatprep.mubr.bf16.mxu1 %v231_v12 }
 0x115   :  { %408 = vmatmul.mubr.bf16.gmra.mxu1 %v230_v13 }
 0x1cd   :  { %v519_v14 = vpop.f32.mrf.mxu1 }
 0x1cf   :  { %v520_v15 = vpop.f32.mrf.mxu1 }
 0x1d0   :  { %v521_v18 = vadd.f32 %v520_v15, %v519_v14 }
 0x1d1   :  { %v522_v19 = vpop.f32.mrf.mxu1 }
 0x1d2   :  { %v402_v20 = vadd.f32 %v521_v18, %v486_v17 }
 0x1d3   :  { %v523_v21 = vpop.f32.mrf.mxu1 }
 0x1d4   :  { %v440_v22 = vmul.f32 %v423_v16, %v402_v20  ;;  %v524_v23 = vadd.f32 %v523_v21, %v522_v19 }
 0x1d5   :  { %v525_v24 = vpop.f32.mrf.mxu1 }
 0x1d6   :  { %v444_v28 = vadd.f32 %v440_v22, %v702_v26  ;;  %v405_v29 = vadd.f32 %v524_v23, %v486_v17 }
 0x1d7   :  { %v526_v32 = vpop.f32.mrf.mxu1 }
 0x1d8   :  { %448 = vst [vmem:[#allocation7] sm:$0xff] %v444_v28  ;;  %v441_v33 = vmul.f32 %v428_v25, %v405_v29  ;;  %v527_v34 = vadd.f32 %v526_v32, %v525_v24 }
 0x1d9   :  { %v528_v36 = vpop.f32.mrf.mxu1 }
 0x1da   :  { %v445_v37 = vadd.f32 %v441_v33, %v707_v27  ;;  %v410_v38 = vadd.f32 %v527_v34, %v486_v17 }
 0x1db   :  { %v529_v39 = vpop.f32.mrf.mxu1 }
 0x1dc   :  { %449 = vst [vmem:[#allocation7 + $0x8] sm:$0xff] %v445_v37  ;;  %v442_v40 = vmul.f32 %v433_v35, %v410_v38  ;;  %v530_v41 = vadd.f32 %v529_v39, %v528_v36 }
 0x1de   :  { %v446_v42 = vadd.f32 %v442_v40, %v714_v30  ;;  %v413_v43 = vadd.f32 %v530_v41, %v486_v17 }
 0x1e0   :  { %450 = vst [vmem:[#allocation7 + $0x10] sm:$0xff] %v446_v42  ;;  %v443_v26 = vmul.f32 %v438_v44, %v413_v43 }
 0x1e2   :  { %v447_v45 = vadd.f32 %v443_v26, %v719_v31 }
 0x1e4   :  { %451 = vst [vmem:[#allocation7 + $0x18] sm:$0xff] %v447_v45 }
 0x1e5   :  { %632 = shalt.err (!%p629_p0)
}
 0x1e6   :  { %463 = dma.vmem_to_hbm [thread:$0]  %s458_s28, 512, %s757_s6, [#allocation4], %s648_s24, %s648_s24, %s649_s25  }
 0x1e7   :  { %645 = dma.done.wait [#allocation4], 512  }
 0x1e8   :  { %646 = vsyncadd [#allocation4], 4294966784 }
 0x1e9   :  { %467 = vsyncpa [#allocation3], 1 }
 0x1ea   :  { %468 = vsyncpa [#allocation6], 1 }
 0x1eb   :  { %469 = vsyncpa [#allocation4], 1 }

</bundles_post_ra>
